<compile_context>
chip_gen: v7x
topology: tpu7x:2x2x1
jax: 0.10.0
libtpu: 0.0.40
codegen_flags: <defaults>
</compile_context>

<pallas_src>
import functools

import jax
import jax.numpy as jnp
from jax.experimental import pallas as pl
from jax.experimental.pallas import tpu as pltpu


# -----------------------------------------------------------------------------
# Shared epilogue: Conv1x1(C->P) -> LayerNorm over P (eps=1e-5) -> ReLU -> Conv1x1(P->C).
# -----------------------------------------------------------------------------
def _channel_add_mlp(context, w1_ref, w2_ref, aff_ref, b2_ref):
    h = jnp.dot(w1_ref[...], context,
                preferred_element_type=jnp.float32) + aff_ref[:, 0:1]      # (P, 1)  (+b1)
    mu = jnp.mean(h, axis=0, keepdims=True)
    var = jnp.mean((h - mu) ** 2, axis=0, keepdims=True)
    h = (h - mu) * jax.lax.rsqrt(var + 1e-5)
    h = h * aff_ref[:, 1:2] + aff_ref[:, 2:3]                              # gamma, beta
    h = jnp.maximum(h, 0.0)
    return jnp.dot(w2_ref[...], h,
                   preferred_element_type=jnp.float32) + b2_ref[...]       # (C, 1)


# -----------------------------------------------------------------------------
# Fused single-sweep kernel: whole (C, HW) slab per batch element in VMEM.
# -----------------------------------------------------------------------------
def _fused_kernel(x_ref, wm_ref, w1_ref, w2_ref, aff_ref, b2_ref, o_ref):
    x_b = x_ref[0]                                                         # (C, HW)
    # 1x1 conv C->1 over all pixels (softmax is shift invariant -> conv bias dropped).
    logits = jnp.dot(wm_ref[...], x_b, preferred_element_type=jnp.float32)  # (1, HW)
    m = logits.max(axis=-1, keepdims=True)                                 # (1, 1)
    e = jnp.exp(logits - m)                                                # (1, HW)
    denom = e.sum(axis=-1, keepdims=True)                                  # (1, 1)
    # context = x @ softmax(logits)^T : contract (C,HW) with (1,HW) over HW -> (C,1).
    weighted = jax.lax.dot_general(
        x_b, e, dimension_numbers=(((1,), (1,)), ((), ())),
        preferred_element_type=jnp.float32)
    context = weighted * pl.reciprocal(denom, approx=False)               # (C, 1)
    add = _channel_add_mlp(context, w1_ref, w2_ref, aff_ref, b2_ref)       # (C, 1)
    o_ref[0] = x_b + add                                                   # lane-broadcast add


# -----------------------------------------------------------------------------
# Streaming pass 1: attention pooling via online softmax over HW tiles + MLP on last tile.
# -----------------------------------------------------------------------------
def _pool_mlp_kernel(x_ref, wm_ref, w1_ref, w2_ref, aff_ref, b2_ref,
                     add_ref, m_sc, l_sc, acc_sc):
    t = pl.program_id(1)
    nt = pl.num_programs(1)

    @pl.when(t == 0)
    def _init():
        m_sc[...] = jnp.full_like(m_sc, -jnp.inf)
        l_sc[...] = jnp.zeros_like(l_sc)
        acc_sc[...] = jnp.zeros_like(acc_sc)

    x_t = x_ref[0]                                                         # (C, T)
    logits = jnp.dot(wm_ref[...], x_t, preferred_element_type=jnp.float32)  # (1, T)

    # Online softmax accumulation: rescale running sums when the max increases.
    m_prev = m_sc[...]                                                     # (1, 1)
    m_new = jnp.maximum(m_prev, logits.max(axis=-1, keepdims=True))
    corr = jnp.exp(m_prev - m_new)                                         # exp(-inf)=0 on tile 0
    e = jnp.exp(logits - m_new)                                            # (1, T)
    l_sc[...] = corr * l_sc[...] + e.sum(axis=-1, keepdims=True)
    weighted = jax.lax.dot_general(                                        # (C, 1)
        x_t, e, dimension_numbers=(((1,), (1,)), ((), ())),
        preferred_element_type=jnp.float32)
    acc_sc[...] = corr * acc_sc[...] + weighted
    m_sc[...] = m_new

    @pl.when(t == nt - 1)
    def _finalize():
        context = acc_sc[...] * pl.reciprocal(l_sc[...], approx=False)     # (C, 1)
        add_ref[0] = _channel_add_mlp(context, w1_ref, w2_ref, aff_ref, b2_ref)


# -----------------------------------------------------------------------------
# Streaming pass 2: out = x + add broadcast over the spatial axis (in place over x).
# -----------------------------------------------------------------------------
def _broadcast_add_kernel(x_ref, add_ref, o_ref):
    o_ref[0] = x_ref[0] + add_ref[0]        # (C, T) + (C, 1) lane-broadcast


def _choose_hw_tile(hw, c, *, max_block_bytes=4 << 20, max_hw_tile=None):
    """Largest spatial tile (multiple of 128 dividing HW, or full HW when HW % 128 != 0)
    such that a (C, tile) f32 block stays under max_block_bytes."""
    if hw % 128 != 0:
        # Full-extent last dim is always a legal block shape.
        # TODO(synk): for huge HW that is not a multiple of 128, pad HW in the wrapper instead.
        return hw
    limit = max(128, (max_block_bytes // (c * 4)) // 128 * 128)
    if max_hw_tile is not None:
        limit = min(limit, max(128, max_hw_tile))
    tile = min(hw, limit)
    tile -= tile % 128
    tile = max(tile, 128)
    while hw % tile != 0:
        tile -= 128
    return tile


def context_block(x, params, *, max_hw_tile=None, fused_threshold_bytes=6 << 20):
    """x: (B, C, H, W) float32. params: dict of GC-block weights. Returns (B, C, H, W)."""
    B, C, H, W = x.shape
    HW = H * W
    P = params["w1"].shape[0]
    x_flat = x.reshape(B, C, HW)

    # Pack the tiny per-channel vectors into one VMEM block: (P, 3) = [b1 | gamma | beta].
    aff = jnp.concatenate([params["b1"], params["gamma"], params["beta"]], axis=1)
    w_bytes = 4 * (C + 2 * P * C + 3 * P + C)

    slab_bytes = C * HW * 4

    # ---------------- Fused single-sweep path: x read once, written once. ----------------
    if slab_bytes <= fused_threshold_bytes and max_hw_tile is None:
        vmem_limit = int(min(40 << 20, max(16 << 20, 4 * slab_bytes + (2 << 20))))
        const = lambda shape: pl.BlockSpec(shape, lambda b: (0,) * len(shape))
        out_flat = pl.pallas_call(
            _fused_kernel,
            out_shape=jax.ShapeDtypeStruct((B, C, HW), jnp.float32),
            grid_spec=pltpu.PrefetchScalarGridSpec(
                num_scalar_prefetch=0,
                grid=(B,),
                in_specs=[
                    pl.BlockSpec((1, C, HW), lambda b: (b, 0, 0)),     # x slab
                    const((1, C)),                                     # conv_mask weight
                    const((P, C)),                                     # channel_add conv1 weight
                    const((C, P)),                                     # channel_add conv2 weight
                    const((P, 3)),                                     # [b1 | gamma | beta]
                    const((C, 1)),                                     # channel_add conv2 bias
                ],
                out_specs=pl.BlockSpec((1, C, HW), lambda b: (b, 0, 0))),
            compiler_params=pltpu.CompilerParams(
                dimension_semantics=("parallel",),
                vmem_limit_bytes=vmem_limit),
            cost_estimate=pl.CostEstimate(
                flops=5 * B * C * HW + 4 * B * C * P,
                transcendentals=B * HW,
                bytes_accessed=8 * B * C * HW + w_bytes),
            input_output_aliases={0: 0},
        )(x_flat, params["wm"], params["w1"], params["w2"], aff, params["b2"])
        return out_flat.reshape(B, C, H, W)

    # ---------------- Streaming two-pass path (large HW): online softmax. ----------------
    tile = _choose_hw_tile(HW, C, max_hw_tile=max_hw_tile)
    n_t = HW // tile
    block_bytes = C * tile * 4
    # Pass 2 holds ~2 in + 2 out block buffers; leave headroom, stay well under v7x's 64 MiB/TC.
    vmem_limit = int(min(48 << 20, max(16 << 20, 5 * block_bytes + (2 << 20))))
    const2 = lambda shape: pl.BlockSpec(shape, lambda b, t: (0,) * len(shape))

    # Pass 1: pooled context + channel_add MLP -> add term (B, C, 1).
    add_term = pl.pallas_call(
        _pool_mlp_kernel,
        out_shape=jax.ShapeDtypeStruct((B, C, 1), jnp.float32),
        grid_spec=pltpu.PrefetchScalarGridSpec(
            num_scalar_prefetch=0,
            grid=(B, n_t),
            in_specs=[
                pl.BlockSpec((1, C, tile), lambda b, t: (b, 0, t)),    # x tile
                const2((1, C)),                                        # conv_mask weight
                const2((P, C)),                                        # channel_add conv1 weight
                const2((C, P)),                                        # channel_add conv2 weight
                const2((P, 3)),                                        # [b1 | gamma | beta]
                const2((C, 1)),                                        # channel_add conv2 bias
            ],
            out_specs=pl.BlockSpec((1, C, 1), lambda b, t: (b, 0, 0)),
            scratch_shapes=[
                pltpu.VMEM((1, 1), jnp.float32),      # running max
                pltpu.VMEM((1, 1), jnp.float32),      # running softmax denominator
                pltpu.VMEM((C, 1), jnp.float32),      # running exp-weighted sum of x
            ]),
        compiler_params=pltpu.CompilerParams(
            dimension_semantics=("parallel", "arbitrary"),
            vmem_limit_bytes=vmem_limit),
        cost_estimate=pl.CostEstimate(
            flops=4 * B * C * HW + 4 * B * C * P,
            transcendentals=B * (HW + n_t),
            bytes_accessed=4 * B * C * HW + 4 * B * C + w_bytes),
    )(x_flat, params["wm"], params["w1"], params["w2"], aff, params["b2"])

    # Pass 2: out = x + add_term, written in place over x.
    # TODO(synk): when C*tile is small (<~2 MiB/block), group several batch elements per grid
    # step to amortize the ~0.35 us per-step overhead.
    out_flat = pl.pallas_call(
        _broadcast_add_kernel,
        out_shape=jax.ShapeDtypeStruct((B, C, HW), jnp.float32),
        grid_spec=pltpu.PrefetchScalarGridSpec(
            num_scalar_prefetch=0,
            grid=(B, n_t),
            in_specs=[
                pl.BlockSpec((1, C, tile), lambda b, t: (b, 0, t)),    # x tile
                pl.BlockSpec((1, C, 1), lambda b, t: (b, 0, 0)),       # add term
            ],
            out_specs=pl.BlockSpec((1, C, tile), lambda b, t: (b, 0, t))),
        compiler_params=pltpu.CompilerParams(
            dimension_semantics=("parallel", "parallel"),
            vmem_limit_bytes=vmem_limit),
        cost_estimate=pl.CostEstimate(
            flops=B * C * HW,
            transcendentals=0,
            bytes_accessed=8 * B * C * HW + 4 * B * C),
        input_output_aliases={0: 0},
    )(x_flat, add_term)

    return out_flat.reshape(B, C, H, W)


def context_block_ref(x, params):
    """Pure-JAX reference mirroring the PyTorch forward."""
    B, C, H, W = x.shape
    HW = H * W
    xf = x.reshape(B, C, HW)
    logits = jnp.einsum("oc,bcs->bos", params["wm"], xf) + params["bm"][0, 0]   # (B,1,HW)
    attn = jax.nn.softmax(logits, axis=-1)
    context = jnp.einsum("bcs,bos->bco", xf, attn)                              # (B,C,1)
    t = jnp.einsum("pc,bco->bpo", params["w1"], context) + params["b1"][None]   # (B,P,1)
    mu = jnp.mean(t, axis=1, keepdims=True)
    var = jnp.mean((t - mu) ** 2, axis=1, keepdims=True)
    t = (t - mu) / jnp.sqrt(var + 1e-5) * params["gamma"][None] + params["beta"][None]
    t = jnp.maximum(t, 0.0)
    add = jnp.einsum("cp,bpo->bco", params["w2"], t) + params["b2"][None]       # (B,C,1)
    return x + add[:, :, :, None]


def make_params(key, C, ratio):
    P = int(C * ratio)
    ks = jax.random.split(key, 6)
    return {
        "wm":    0.1 * jax.random.normal(ks[0], (1, C), jnp.float32),
        "bm":    0.05 * jax.random.normal(ks[5], (1, 1), jnp.float32),
        "w1":    0.1 * jax.random.normal(ks[1], (P, C), jnp.float32),
        "b1":    0.05 * jax.random.normal(ks[2], (P, 1), jnp.float32),
        "gamma": jnp.ones((P, 1), jnp.float32),
        "beta":  jnp.zeros((P, 1), jnp.float32),
        "w2":    0.1 * jax.random.normal(ks[3], (C, P), jnp.float32),
        "b2":    0.05 * jax.random.normal(ks[4], (C, 1), jnp.float32),
    }


if __name__ == "__main__":
    key = jax.random.PRNGKey(0)
    kx, kp = jax.random.split(key)

    B, C, H, W = 2, 4, 16, 16
    ratio = 0.5                      # planes = int(4 * 0.5) = 2
    x = jax.random.normal(kx, (B, C, H, W), jnp.float32)
    params = make_params(kp, C, ratio)
    ref = context_block_ref(x, params)

    # Path A: fused single-sweep kernel (default for small per-batch slabs).
    out_fused = jax.block_until_ready(jax.jit(context_block)(x, params))
    assert out_fused.shape == (B, C, H, W)
    assert jnp.allclose(out_fused, ref, atol=1e-4, rtol=1e-4), "fused path mismatch vs reference"

    # Path B: forced streaming two-pass path with online softmax (HW=256 split into 2 tiles).
    fn_stream = jax.jit(functools.partial(context_block, max_hw_tile=128,
                                          fused_threshold_bytes=0))
    out_stream = jax.block_until_ready(fn_stream(x, params))
    assert out_stream.shape == (B, C, H, W)
    assert jnp.allclose(out_stream, ref, atol=1e-4, rtol=1e-4), "streaming path mismatch vs reference"

    print("KERNEL_OK")
</pallas_src>

<mosaic_0001>
module attributes {stable_mosaic.version = 11 : i64} {
  func.func @_fused_kernel(%arg0: i32, %arg1: memref<1x4x256xf32, #tpu.memory_space<vmem>>, %arg2: memref<1x4xf32, #tpu.memory_space<vmem>>, %arg3: memref<2x4xf32, #tpu.memory_space<vmem>>, %arg4: memref<4x2xf32, #tpu.memory_space<vmem>>, %arg5: memref<2x3xf32, #tpu.memory_space<vmem>>, %arg6: memref<4x1xf32, #tpu.memory_space<vmem>>, %arg7: memref<1x4x256xf32, #tpu.memory_space<vmem>>) attributes {dimension_semantics = [#tpu.dimension_semantics<parallel>], iteration_bounds = array<i64: 2>, scalar_prefetch = 0 : i64, scratch_operands = 0 : i64, tpu.core_type = #tpu.core_type<tc>, window_params = [{transform_indices = @transform_0, window_bounds = array<i64: 1, 4, 256>}, {pipeline_mode = #tpu.pipeline_mode<synchronous>, transform_indices = @transform_1, window_bounds = array<i64: 1, 4>}, {pipeline_mode = #tpu.pipeline_mode<synchronous>, transform_indices = @transform_2, window_bounds = array<i64: 2, 4>}, {pipeline_mode = #tpu.pipeline_mode<synchronous>, transform_indices = @transform_3, window_bounds = array<i64: 4, 2>}, {pipeline_mode = #tpu.pipeline_mode<synchronous>, transform_indices = @transform_4, window_bounds = array<i64: 2, 3>}, {pipeline_mode = #tpu.pipeline_mode<synchronous>, transform_indices = @transform_5, window_bounds = array<i64: 4, 1>}, {transform_indices = @transform_6, window_bounds = array<i64: 1, 4, 256>}]} {
    %c0 = arith.constant 0 : index
    %c0_0 = arith.constant 0 : index
    %c0_1 = arith.constant 0 : index
    %0 = vector.load %arg1[%c0, %c0_0, %c0_1] : memref<1x4x256xf32, #tpu.memory_space<vmem>>, vector<1x4x256xf32>
    %1 = vector.shape_cast %0 : vector<1x4x256xf32> to vector<4x256xf32>
    %c0_2 = arith.constant 0 : index
    %c0_3 = arith.constant 0 : index
    %2 = vector.load %arg2[%c0_2, %c0_3] : memref<1x4xf32, #tpu.memory_space<vmem>>, vector<1x4xf32>
    %cst = arith.constant dense<0.000000e+00> : vector<1x256xf32>
    %3 = tpu.matmul %2, %1, %cst {dimension_numbers = #tpu.dot_dimension_numbers<[1], [0], [0], [1], [0, 0, 1, 1], [], []>} : vector<1x4xf32>, vector<4x256xf32>, vector<1x256xf32> -> vector<1x256xf32>
    %cst_4 = arith.constant dense<0xFF800000> : vector<1xf32>
    %4 = vector.multi_reduction <maximumf>, %3, %cst_4 [1] : vector<1x256xf32> to vector<1xf32>
    %5 = vector.shape_cast %4 : vector<1xf32> to vector<1x1xf32>
    %6 = vector.broadcast %5 : vector<1x1xf32> to vector<1x256xf32>
    %7 = arith.subf %3, %6 : vector<1x256xf32>
    %8 = math.exp %7 : vector<1x256xf32>
    %cst_5 = arith.constant dense<0.000000e+00> : vector<1xf32>
    %9 = vector.multi_reduction <add>, %8, %cst_5 [1] : vector<1x256xf32> to vector<1xf32>
    %10 = vector.shape_cast %9 : vector<1xf32> to vector<1x1xf32>
    %cst_6 = arith.constant dense<0.000000e+00> : vector<4x1xf32>
    %11 = tpu.matmul %1, %8, %cst_6 {dimension_numbers = #tpu.dot_dimension_numbers<[1], [1], [0], [0], [0, 0, 1, 0], [], []>} : vector<4x256xf32>, vector<1x256xf32>, vector<4x1xf32> -> vector<4x1xf32>
    %12 = tpu.reciprocal %10 : vector<1x1xf32> -> vector<1x1xf32>
    %13 = vector.broadcast %12 : vector<1x1xf32> to vector<4x1xf32>
    %14 = arith.mulf %11, %13 : vector<4x1xf32>
    %c0_7 = arith.constant 0 : index
    %c0_8 = arith.constant 0 : index
    %15 = vector.load %arg3[%c0_7, %c0_8] : memref<2x4xf32, #tpu.memory_space<vmem>>, vector<2x4xf32>
    %cst_9 = arith.constant dense<0.000000e+00> : vector<2x1xf32>
    %16 = tpu.matmul %15, %14, %cst_9 {dimension_numbers = #tpu.dot_dimension_numbers<[1], [0], [0], [1], [0, 0, 1, 1], [], []>} : vector<2x4xf32>, vector<4x1xf32>, vector<2x1xf32> -> vector<2x1xf32>
    %c0_10 = arith.constant 0 : index
    %c0_11 = arith.constant 0 : index
    %17 = vector.load %arg5[%c0_10, %c0_11] : memref<2x3xf32, #tpu.memory_space<vmem>>, vector<2x1xf32>
    %18 = arith.addf %16, %17 : vector<2x1xf32>
    %cst_12 = arith.constant dense<0.000000e+00> : vector<1xf32>
    %19 = vector.multi_reduction <add>, %18, %cst_12 [0] : vector<2x1xf32> to vector<1xf32>
    %20 = vector.shape_cast %19 : vector<1xf32> to vector<1x1xf32>
    %cst_13 = arith.constant 2.000000e+00 : f32
    %21 = vector.broadcast %cst_13 : f32 to vector<1x1xf32>
    %22 = arith.divf %20, %21 : vector<1x1xf32>
    %23 = vector.broadcast %22 : vector<1x1xf32> to vector<2x1xf32>
    %24 = arith.subf %18, %23 : vector<2x1xf32>
    %25 = arith.mulf %24, %24 : vector<2x1xf32>
    %cst_14 = arith.constant dense<0.000000e+00> : vector<1xf32>
    %26 = vector.multi_reduction <add>, %25, %cst_14 [0] : vector<2x1xf32> to vector<1xf32>
    %27 = vector.shape_cast %26 : vector<1xf32> to vector<1x1xf32>
    %cst_15 = arith.constant 2.000000e+00 : f32
    %28 = vector.broadcast %cst_15 : f32 to vector<1x1xf32>
    %29 = arith.divf %27, %28 : vector<1x1xf32>
    %30 = vector.broadcast %22 : vector<1x1xf32> to vector<2x1xf32>
    %31 = arith.subf %18, %30 : vector<2x1xf32>
    %cst_16 = arith.constant 9.99999974E-6 : f32
    %32 = vector.broadcast %cst_16 : f32 to vector<1x1xf32>
    %33 = arith.addf %29, %32 : vector<1x1xf32>
    %34 = math.rsqrt %33 : vector<1x1xf32>
    %35 = vector.broadcast %34 : vector<1x1xf32> to vector<2x1xf32>
    %36 = arith.mulf %31, %35 : vector<2x1xf32>
    %c0_17 = arith.constant 0 : index
    %c1 = arith.constant 1 : index
    %37 = vector.load %arg5[%c0_17, %c1] : memref<2x3xf32, #tpu.memory_space<vmem>>, vector<2x1xf32>
    %38 = arith.mulf %36, %37 : vector<2x1xf32>
    %c0_18 = arith.constant 0 : index
    %c2 = arith.constant 2 : index
    %39 = vector.load %arg5[%c0_18, %c2] : memref<2x3xf32, #tpu.memory_space<vmem>>, vector<2x1xf32>
    %40 = arith.addf %38, %39 : vector<2x1xf32>
    %cst_19 = arith.constant 0.000000e+00 : f32
    %41 = vector.broadcast %cst_19 : f32 to vector<2x1xf32>
    %42 = arith.maximumf %40, %41 : vector<2x1xf32>
    %c0_20 = arith.constant 0 : index
    %c0_21 = arith.constant 0 : index
    %43 = vector.load %arg4[%c0_20, %c0_21] : memref<4x2xf32, #tpu.memory_space<vmem>>, vector<4x2xf32>
    %cst_22 = arith.constant dense<0.000000e+00> : vector<4x1xf32>
    %44 = tpu.matmul %43, %42, %cst_22 {dimension_numbers = #tpu.dot_dimension_numbers<[1], [0], [0], [1], [0, 0, 1, 1], [], []>} : vector<4x2xf32>, vector<2x1xf32>, vector<4x1xf32> -> vector<4x1xf32>
    %c0_23 = arith.constant 0 : index
    %c0_24 = arith.constant 0 : index
    %45 = vector.load %arg6[%c0_23, %c0_24] : memref<4x1xf32, #tpu.memory_space<vmem>>, vector<4x1xf32>
    %46 = arith.addf %44, %45 : vector<4x1xf32>
    %47 = vector.broadcast %46 : vector<4x1xf32> to vector<4x256xf32>
    %48 = arith.addf %1, %47 : vector<4x256xf32>
    %c0_25 = arith.constant 0 : index
    %c0_26 = arith.constant 0 : index
    %c0_27 = arith.constant 0 : index
    %49 = vector.load %arg7[%c0_25, %c0_26, %c0_27] : memref<1x4x256xf32, #tpu.memory_space<vmem>>, vector<1x4x256xf32>
    %50 = vector.shape_cast %49 : vector<1x4x256xf32> to vector<4x256xf32>
    %51 = vector.shape_cast %48 : vector<4x256xf32> to vector<1x4x256xf32>
    tpu.vector_store %arg7[%c0_25, %c0_26, %c0_27], %51 {strides = array<i32>} : memref<1x4x256xf32, #tpu.memory_space<vmem>>, vector<1x4x256xf32>,
    return
  }
  func.func @transform_0(%arg0: i32) -> (i32, i32, i32) {
    %c0_i32 = arith.constant 0 : i32
    %c0_i32_0 = arith.constant 0 : i32
    %c0_i32_1 = arith.constant 0 : i32
    return %arg0, %c0_i32, %c0_i32_0 : i32, i32, i32
  }
  func.func @transform_1(%arg0: i32) -> (i32, i32) {
    %c0_i32 = arith.constant 0 : i32
    %c0_i32_0 = arith.constant 0 : i32
    %c0_i32_1 = arith.constant 0 : i32
    return %c0_i32, %c0_i32_0 : i32, i32
  }
  func.func @transform_2(%arg0: i32) -> (i32, i32) {
    %c0_i32 = arith.constant 0 : i32
    %c0_i32_0 = arith.constant 0 : i32
    %c0_i32_1 = arith.constant 0 : i32
    return %c0_i32, %c0_i32_0 : i32, i32
  }
  func.func @transform_3(%arg0: i32) -> (i32, i32) {
    %c0_i32 = arith.constant 0 : i32
    %c0_i32_0 = arith.constant 0 : i32
    %c0_i32_1 = arith.constant 0 : i32
    return %c0_i32, %c0_i32_0 : i32, i32
  }
  func.func @transform_4(%arg0: i32) -> (i32, i32) {
    %c0_i32 = arith.constant 0 : i32
    %c0_i32_0 = arith.constant 0 : i32
    %c0_i32_1 = arith.constant 0 : i32
    return %c0_i32, %c0_i32_0 : i32, i32
  }
  func.func @transform_5(%arg0: i32) -> (i32, i32) {
    %c0_i32 = arith.constant 0 : i32
    %c0_i32_0 = arith.constant 0 : i32
    %c0_i32_1 = arith.constant 0 : i32
    return %c0_i32, %c0_i32_0 : i32, i32
  }
  func.func @transform_6(%arg0: i32) -> (i32, i32, i32) {
    %c0_i32 = arith.constant 0 : i32
    %c0_i32_0 = arith.constant 0 : i32
    %c0_i32_1 = arith.constant 0 : i32
    return %arg0, %c0_i32, %c0_i32_0 : i32, i32, i32
  }
}

</mosaic_0001>

<bundles_post_ra>
// kernel: context_block.1
= control target key start
LH: loop header
LB: loop body
LE: loop exit
PB: predicated region body
PF: predicated region fallthrough
CT: control target
= control target key end

     0   :  { %s748_s21 = smov 0   ;;  %s809_s0 = inlined_call_operand.vmem [shape: f32[2,4,256], index: 0, kind: input, shape index: {}, may-alias: {0,6}]   ;;  %s810_s1 = inlined_call_operand.vmem [shape: f32[1,4], index: 1, kind: input, shape index: {}]   ;;  %s811_s2 = inlined_call_operand.vmem [shape: f32[2,4], index: 2, kind: input, shape index: {}]   ;;  %s812_s3 = inlined_call_operand.vmem [shape: f32[4,2], index: 3, kind: input, shape index: {}]   ;;  %s813_s4 = inlined_call_operand.vmem [shape: f32[2,3], index: 4, kind: input, shape index: {}]   ;;  %s814_s5 = inlined_call_operand.vmem [shape: f32[4,1], index: 5, kind: input, shape index: {}]   ;;  %s815_s6 = inlined_call_operand.vmem [shape: f32[2,4,256], index: 6, kind: output, shape index: {}, may-alias: {0,6}]  }
   0x1 LB: > { %s640_s22 = sadd.s32 4294967295, %s705_s21   ;;  %p644_p0 = scmp.ge.s32.totalorder %s705_s21, 1  ;;  %s705_s21 = sphi %s748_s21, %s16_s21  }
   0x2   : > { %p212_p1 = scmp.lt.s32.totalorder %s705_s21, 3 }
   0x4   : > { %p213_p2 = pnand %p644_p0, %p212_p1 }
   0x5   : > { %p242_p3 = scmp.lt.s32.totalorder (!%p213_p2), %s640_s22, 1  ;;  %v707_v0 = vmov (!%p213_p2), 0.0   ;;  %vm260_vm0 = vcmask (!%p213_p2), 1043456   ;;  %v253_v3 = vld [vmem:[%s810_s1] sm:$0x1] (!%p213_p2)  ;;  %vm256_vm1 = vcmask (!%p213_p2), 31744   ;;  %v353_v14 = vlaneseq (!%p213_p2) }
   0x6   : > { %216 = sbr.rel (%p213_p2) target bundleno = 1173 (0x495), region = 44  ;;  %329 = vmatprep.mubr.f32.mxu0 (!%p213_p2), %v707_v0  ;;  %664 = vmatprep.subr.mxu1 (!%p213_p2), %v707_v0  ;;  %vm336_vm2 = vcmask (!%p213_p2), 1040384   ;;  %vm708_vm3 = vmmov (!%p213_p2), 0   ;;  %v381_v30 = vld [vmem:[%s813_s4] sm:$0x3] (!%p213_p2)  ;;  %s709_s7 = smov (!%p213_p2), 127  }
   0x7   : > { %v777_v15 = vshrl.u32 (!%p213_p2), %v353_v14, 7  ;;  %666 = vmatprep.mubr.msk.f32.mxu1 (!%p213_p2), %vm708_vm3, %v707_v0  ;;  %s710_s8 = smov (!%p213_p2), 126   ;;  %v380_v36 = vld [vmem:[%s811_s2] sm:$0x3] (!%p213_p2)  ;;  %vm458_vm4 = vcmask (!%p213_p2), 1024   ;;  %vm497_vm5 = vcmask (!%p213_p2), 1041408  }
   0x8   : > { %vm493_vm6 = vcmask (!%p213_p2), 15360  }
   0x9   : > { %v355_v16 = vsub.s32 (!%p213_p2), 0, %v777_v15 }
   0xd   : > { %s817_s22 = smov (!%p242_p3, %s640_s22), 1 }
   0xe   : > { %s658_s23 = sshll.u32 %s817_s22, 3 }
   0xf   : > { %s246_s26 = scalar_lea.vmem %s809_s0, %s658_s23  ;;  %s251_s17 = scalar_lea.vmem %s815_s6, %s658_s23 }
  0x10   : > { %v764_v1 = vld [vmem:[%s246_s26] sm:$0xff] }
  0x11   : > { %v255_v2 = vcombine.high %v764_v1, %v764_v1 }
  0x13   : > { %649 = vmatprep.subr.msk.mxu0 %vm260_vm0, %v255_v2 }
  0x14   : > { %650 = vmatpush1.msk.msra.mxu0 %vm260_vm0, %v764_v1 }
  0x15   : > { %651 = vmatmul.mubr.msk.f32.vlgmr.msra.gmra.mrb[0].mxu0 %vm256_vm1, %v253_v3  ;;  %669 = vmatprep.subr.mxu0 %v707_v0  ;;  %v491_v3 = vld [vmem:[%s812_s3] sm:$0xf] }
  0x16   : > { %671 = vmatprep.mubr.msk.f32.mxu0 %vm708_vm3, %v707_v0 }
  0xe8   : > { %v331_v4 = vpop.f32.mrb[0].mxu0 }
  0xe9   : > { %v333_v5 = vpop.f32.mrb[1].mxu0  ;;  %v337_v6 = vsel %vm336_vm2, %v331_v4, -inf }
  0xea   : > { %v338_v7 = vsel %vm336_vm2, %v333_v5, -inf }
  0xeb   : > { %v339_v8 = vmax.f32 %v337_v6, %v338_v7 }
  0xed   : > { %340 = vmax.xlane.f32.xlu0 %v339_v8 }
 0x17a   : > { %v341_v9 = vpop.xlane.xlu0 %340 }
 0x17b   : > { %v342_v10 = vsub.f32 %v331_v4, %v341_v9  ;;  %v343_v11 = vsub.f32 %v333_v5, %v341_v9  ;;  %v711_v4 = vmov 0   ;;  %v492_v5 = vld [vmem:[%s814_s5] sm:$0xf]  ;;  %v712_v9 = vmov 839922192  }
 0x17c   : > { %688 = vset.pattern.permute.xlu1 %v711_v4  ;;  %689 = vset.pattern.permute.xlu0 %v711_v4 }
 0x17d   : > { %v344_v12 = vmul.f32 1.442695, %v342_v10  ;;  %v346_v13 = vmul.f32 1.442695, %v343_v11  ;;  %v576_v10 = vunpack.c.l.s4 %v712_v9 }
 0x17f   : > { %691 = vpow2.f32 %v344_v12  ;;  %v577_v11 = vunpack.c.0.s8 %v576_v10 }
 0x180   : > { %693 = vpow2.f32 %v346_v13 }
 0x181   : > { %v580_v12 = vsub.s32 %v577_v11, %v777_v15 }
 0x189   : > { %v692_v17 = vpop.eup %691 }
 0x18a   : > { %v694_v18 = vpop.eup %693  ;;  %v348_v19 = vsel %vm336_vm2, %v692_v17, 0.0  ;;  %v356_v20 = vrot.slane %v692_v17, %v355_v16 }
 0x18b   : > { %v349_v21 = vsel %vm336_vm2, %v694_v18, 0.0  ;;  %v360_v22 = vrot.slane %v694_v18, %v355_v16 }
 0x18c   : > { %v350_v23 = vadd.f32 %v349_v21, %v348_v19 }
 0x18d   : > { %v363_v24 = vcombine.low %v356_v20, %v360_v22 }
 0x18e   : > { %351 = vadd.xlane.f32.xlu0 %v350_v23 }
 0x18f   : > { %v365_v25 = vmul.f32 %v363_v24, %v764_v1 }
 0x191   : > { %v367_v26 = vcombine.high %v365_v25, %v365_v25  ;;  %v369_v27 = vsel %vm260_vm0, %v365_v25, 0.0 }
 0x193   : > { %v370_v28 = vsel %vm260_vm0, %v367_v26, 0.0 }
 0x194   : > { %v371_v29 = vadd.f32 %v370_v28, %v369_v27 }
 0x196   : > { %372 = vadd.xlane.f32.xlu1 %v371_v29 }
 0x1a4   : > { %486 = vrot.lane.b32.xlu0 %v381_v30, %s710_s8 }
 0x1a7   : > { %482 = vrot.lane.b32.xlu1 %v381_v30, %s709_s7 }
 0x21b   : > { %v352_v31 = vpop.xlane.xlu0 %351 }
 0x21c   : > { %695 = vrcp.f32 %v352_v31 }
 0x21f   : > { %v487_v62 = vpop.permute.xlu0 %486 }
 0x223   : > { %v373_v34 = vpop.xlane.xlu1 %372 }
 0x226   : > { %v696_v32 = vpop.eup %695 }
 0x227   : > { %v378_v33 = vrot.slane %v696_v32, %v355_v16  ;;  %v483_v60 = vpop.permute.xlu1 %482 }
 0x229   : > { %v379_v35 = vmul.f32 %v378_v33, %v373_v34 }
 0x22b   : > { %665 = vmatpush3.msk.msra.mxu1 %vm260_vm0, %v379_v35 }
 0x22c   : > { %667 = vmatmul.mubr.msk.f32.vlgmr.msra.gmra.mrb[0].mxu1 %vm256_vm1, %v380_v36 }
 0x2ff   : > { %v454_v37 = vpop.f32.mrb[0].mxu1 }
 0x300   : > { %v455_v38 = vadd.f32 %v454_v37, %v381_v30  ;;  %v668_v39 = vpop.f32.mrb[1].mxu1 }
 0x302   : > { %v459_v40 = vsel %vm458_vm4, %v455_v38, 0.0 }
 0x303   : > { %v460_v41 = vrot.slane %v459_v40, 4 }
 0x305   : > { %v461_v42 = vadd.f32 %v460_v41, %v459_v40 }
 0x307   : > { %v462_v43 = vrot.slane %v461_v42, 2 }
 0x309   : > { %v463_v44 = vadd.f32 %v462_v43, %v461_v42 }
 0x30b   : > { %v464_v45 = vrot.slane %v463_v44, 1 }
 0x30d   : > { %v465_v46 = vadd.f32 %v464_v45, %v463_v44 }
 0x30f   : > { %v467_v47 = vmul.f32 0.5, %v465_v46 }
 0x311   : > { %v468_v48 = vsub.f32 %v455_v38, %v467_v47 }
 0x313   : > { %v469_v49 = vmul.f32 %v468_v48, %v468_v48 }
 0x315   : > { %v470_v50 = vsel %vm458_vm4, %v469_v49, 0.0 }
 0x316   : > { %v471_v51 = vrot.slane %v470_v50, 4 }
 0x318   : > { %v472_v52 = vadd.f32 %v471_v51, %v470_v50 }
 0x31a   : > { %v473_v53 = vrot.slane %v472_v52, 2 }
 0x31c   : > { %v474_v54 = vadd.f32 %v473_v53, %v472_v52 }
 0x31e   : > { %v475_v55 = vrot.slane %v474_v54, 1 }
 0x320   : > { %v476_v56 = vadd.f32 %v475_v55, %v474_v54 }
 0x322   : > { %v477_v57 = vmul.f32 0.5, %v476_v56 }
 0x324   : > { %v478_v58 = vadd.f32 1e-05, %v477_v57 }
 0x326   : > { %697 = vrsqrt.f32 %v478_v58 }
 0x330   : > { %v698_v59 = vpop.eup %697 }
 0x331   : > { %v480_v61 = vmul.f32 %v698_v59, %v468_v48 }
 0x333   : > { %v485_v63 = vmul.f32 %v483_v60, %v480_v61 }
 0x335   : > { %v489_v0 = vadd.f32 %v487_v62, %v485_v63 }
 0x337   : > { %v490_v2 = vmax.f32 %v489_v0, 0.0 }
 0x339   : > { %670 = vmatpush3.msk.msra.mxu0 %vm497_vm5, %v490_v2 }
 0x33a   : > { %672 = vmatmul.mubr.msk.f32.vlgmr.msra.gmra.mrb[2].mxu0 %vm493_vm6, %v491_v3 }
 0x40d   : > { %v567_v6 = vpop.f32.mrb[2].mxu0 }
 0x40e   : > { %v568_v7 = vadd.f32 %v567_v6, %v492_v5  ;;  %v673_v8 = vpop.f32.mrb[3].mxu0 }
 0x410   : > { %573 = vperm.xlu1 %688, %v568_v7  }
 0x48f   : > { %v574_v13 = vpop.permute.xlu1 %573 }
 0x490   : > { %v581_v14 = vrot.slane %v574_v13, %v580_v12 }
 0x492   : > { %v583_v16 = vadd.f32 %v581_v14, %v764_v1 }
 0x494   : > { %584 = vst [vmem:[%s251_s17] sm:$0xff] %v583_v16 }
 0x495 PF: > { %s16_s21 = sadd.s32 1, %s705_s21  }
 0x496   : > { %p13_p4 = scmp.ge.s32.totalorder %s16_s21, 4  }
 0x498   :  { %15 = sbr.rel (!%p13_p4) target bundleno = 1 (0x1), region = 74 }

</bundles_post_ra>
